<compile_context>
chip_gen: v5e
topology: v5e:2x2
jax: 0.10.0
libtpu: 0.0.40
codegen_flags: <defaults>
</compile_context>

<pallas_src>
import jax
import jax.numpy as jnp
from jax import lax
from jax.experimental import pallas as pl
from jax.experimental.pallas import tpu as pltpu


def _round_up(x, m):
    return (x + m - 1) // m * m


def rnn_relu_kernel(x_ref, wih_t_ref, whh_t_ref, h0_ref, out_ref,
                    h_scratch, xproj_scratch):
    """One grid step = tb timesteps of h_t = relu(x_t@W_ih^T + h_{t-1}@W_hh^T)
    for one batch block."""
    s_idx = pl.program_id(1)                        # time-block index (sequential)

    @pl.when(s_idx == 0)
    def _():                                        # new batch block: load h_0
        h_scratch[...] = h0_ref[0].astype(jnp.float32)

    tb, bb, i_dim = x_ref.shape                     # static block sizes
    compute_dtype = whh_t_ref.dtype                 # bf16 (default) or f32

    # Fused input projection for the whole time block: one wide MXU matmul
    # (M = tb*bb) instead of tb tiny M = bb matmuls on the serial path.
    x_blk = x_ref[...].reshape(tb * bb, i_dim).astype(compute_dtype)
    xproj_scratch[...] = jnp.dot(x_blk, wih_t_ref[...],
                                 preferred_element_type=jnp.float32)

    whh_t = whh_t_ref[...]                          # (Hp, Hp), pre-transposed

    def body(i, h):
        row = pl.multiple_of(i * bb, bb)            # sublane-aligned slab start
        pre = xproj_scratch[pl.ds(row, bb), :] + jnp.dot(
            h.astype(compute_dtype), whh_t, preferred_element_type=jnp.float32)
        h_new = jnp.maximum(pre, 0.0)               # f32 add / relu / carry
        out_ref[i] = h_new.astype(out_ref.dtype)    # single store per timestep
        return h_new

    # Capped unroll: LLO visibility without bloating the instruction stream.
    h_final = lax.fori_loop(0, tb, body, h_scratch[...],
                            unroll=min(int(tb), 8))
    h_scratch[...] = h_final                        # carry to next time block


def orthornn_forward(t, h_0, w_ih, w_hh, *, block_t=32, block_b=None,
                     compute_dtype=jnp.bfloat16, out_dtype=None):
    """Pallas OrthoRNN.forward(t, h_0).

    t: (T,B,I)  h_0: (1,B,H)  w_ih: (H,I)  w_hh: (H,H)
    Returns (output (T,B,H), h_n (1,B,H)).
    """
    T, B, I = t.shape
    H = w_hh.shape[0]
    out_dtype = jnp.dtype(t.dtype if out_dtype is None else out_dtype)
    compute_dtype = jnp.dtype(compute_dtype)

    # ---- TPU-friendly padding ------------------------------------------------
    Bp = _round_up(B, 8)             # f32 sublane multiple
    Hp = _round_up(H, 128)           # lane multiple: dense MXU + unmasked stores
    tb = max(1, min(block_t, T))     # time-block size
    Tp = _round_up(T, tb)            # pad the tail; don't shrink tb

    # Batch block: leading "parallel" grid axis (v7x's 2 TCs can split batch;
    # the time recurrence must stay sequential on one core).
    bb = Bp if block_b is None else min(_round_up(block_b, 8), Bp)
    while Bp % bb != 0:
        bb -= 8

    x_p = jnp.zeros((Tp, Bp, I), t.dtype).at[:T, :B, :].set(t)
    h0_p = jnp.zeros((1, Bp, Hp), jnp.float32).at[:, :B, :H].set(
        h_0.astype(jnp.float32))
    # Pre-transposed, zero-padded, compute-dtype weights. Zero padding keeps the
    # padded hidden columns / batch rows exactly zero through the recurrence.
    wih_t = jnp.zeros((I, Hp), compute_dtype).at[:, :H].set(
        w_ih.T.astype(compute_dtype))
    whh_t = jnp.zeros((Hp, Hp), compute_dtype).at[:H, :H].set(
        w_hh.T.astype(compute_dtype))

    # ---- explicit VMEM budget --------------------------------------------------
    c_sz = compute_dtype.itemsize
    vmem_need = (2 * tb * bb * I * t.dtype.itemsize       # x slab (dbl-buffered)
                 + 2 * tb * bb * Hp * out_dtype.itemsize  # out slab
                 + 2 * I * Hp * c_sz + 2 * Hp * Hp * c_sz # weights
                 + 2 * bb * Hp * 4                        # h_0 block
                 + bb * Hp * 4 + tb * bb * Hp * 4)        # scratch
    vmem_limit = int(min(max(2 * vmem_need + (2 << 20), 8 << 20), 64 << 20))

    grid_spec = pltpu.PrefetchScalarGridSpec(
        num_scalar_prefetch=0,
        grid=(Bp // bb, Tp // tb),
        in_specs=[
            pl.BlockSpec((tb, bb, I), lambda b, s: (s, b, 0)),   # x time slab
            pl.BlockSpec((I, Hp), lambda b, s: (0, 0)),          # W_ih^T (resident)
            pl.BlockSpec((Hp, Hp), lambda b, s: (0, 0)),         # W_hh^T (resident)
            pl.BlockSpec((1, bb, Hp), lambda b, s: (0, b, 0)),   # h_0
        ],
        out_specs=pl.BlockSpec((tb, bb, Hp), lambda b, s: (s, b, 0)),
        scratch_shapes=[
            pltpu.VMEM((bb, Hp), jnp.float32),          # hidden-state carry
            pltpu.VMEM((tb * bb, Hp), jnp.float32),     # fused x-projection slab
        ],
    )

    out_p = pl.pallas_call(
        rnn_relu_kernel,
        out_shape=jax.ShapeDtypeStruct((Tp, Bp, Hp), out_dtype),
        grid_spec=grid_spec,
        compiler_params=pltpu.CompilerParams(
            dimension_semantics=("parallel", "arbitrary"),
            vmem_limit_bytes=vmem_limit,
        ),
    )(x_p, wih_t, whh_t, h0_p)

    out = out_p[:T, :B, :H]
    # h_n is the last hidden state; exact while out_dtype == f32.
    # TODO(synk): if out_dtype is narrowed (bf16 writeback), emit a separate
    # small f32 h_n output from the kernel instead of slicing `out`.
    h_n = out[T - 1:T]
    return out, h_n


def orthornn_forward_ref(t, h_0, w_ih, w_hh):
    """Pure-JAX reference (lax.scan) of the same recurrence."""
    def step(h, x_t):
        h_new = jnp.maximum(x_t @ w_ih.T + h @ w_hh.T, 0.0)
        return h_new, h_new
    h_last, outs = lax.scan(step, h_0[0], t)
    return outs, h_last[None]


if __name__ == "__main__":
    # Small, deterministic setup consistent with the module:
    # input_size=32, hidden_size=32, num_layers=1, no bias, unidirectional.
    T, B, I, H = 8, 2, 32, 32

    key = jax.random.PRNGKey(0)
    k1, k2, k3, k4 = jax.random.split(key, 4)

    # PyTorch nn.RNN init: U(-1/sqrt(H), 1/sqrt(H)); reproduced deterministically.
    bound = 1.0 / (H ** 0.5)
    w_ih = jax.random.uniform(k1, (H, I), jnp.float32, -bound, bound)
    w_hh = jax.random.uniform(k2, (H, H), jnp.float32, -bound, bound)

    x = jax.random.normal(k3, (T, B, I), jnp.float32)
    h0 = jax.random.normal(k4, (1, B, H), jnp.float32)

    out_ref, h_n_ref = orthornn_forward_ref(x, h0, w_ih, w_hh)

    # Exact-parity path (f32 MXU operands).
    out32, hn32 = orthornn_forward(x, h0, w_ih, w_hh,
                                   compute_dtype=jnp.float32)
    out32 = jax.block_until_ready(out32)
    hn32 = jax.block_until_ready(hn32)
    assert out32.shape == (T, B, H) and hn32.shape == (1, B, H)
    assert jnp.allclose(out32, out_ref, atol=1e-5, rtol=1e-5)
    assert jnp.allclose(hn32, h_n_ref, atol=1e-5, rtol=1e-5)

    # Performance-default path (bf16 MXU operands, f32 accumulation & carry).
    out16, hn16 = orthornn_forward(x, h0, w_ih, w_hh)
    out16 = jax.block_until_ready(out16)
    hn16 = jax.block_until_ready(hn16)
    assert out16.shape == (T, B, H) and hn16.shape == (1, B, H)
    assert jnp.allclose(out16, out_ref, atol=5e-2, rtol=5e-2)
    assert jnp.allclose(hn16, h_n_ref, atol=5e-2, rtol=5e-2)

    print("KERNEL_OK")
</pallas_src>

<mosaic_0001>
module attributes {stable_mosaic.version = 11 : i64} {
  func.func @rnn_relu_kernel(%arg0: i32, %arg1: i32, %arg2: memref<8x8x32xf32, #tpu.memory_space<vmem>>, %arg3: memref<32x128xf32, #tpu.memory_space<vmem>>, %arg4: memref<128x128xf32, #tpu.memory_space<vmem>>, %arg5: memref<1x8x128xf32, #tpu.memory_space<vmem>>, %arg6: memref<8x8x128xf32, #tpu.memory_space<vmem>>, %arg7: memref<8x128xf32, #tpu.memory_space<vmem>>, %arg8: memref<64x128xf32, #tpu.memory_space<vmem>>) attributes {dimension_semantics = [#tpu.dimension_semantics<parallel>, #tpu.dimension_semantics<arbitrary>], iteration_bounds = array<i64: 1, 1>, scalar_prefetch = 0 : i64, scratch_operands = 2 : i64, tpu.core_type = #tpu.core_type<tc>, window_params = [{transform_indices = @transform_0, window_bounds = array<i64: 8, 8, 32>}, {pipeline_mode = #tpu.pipeline_mode<synchronous>, transform_indices = @transform_1, window_bounds = array<i64: 32, 128>}, {pipeline_mode = #tpu.pipeline_mode<synchronous>, transform_indices = @transform_2, window_bounds = array<i64: 128, 128>}, {transform_indices = @transform_3, window_bounds = array<i64: 1, 8, 128>}, {transform_indices = @transform_4, window_bounds = array<i64: 8, 8, 128>}]} {
    %c0_i32 = arith.constant 0 : i32
    %0 = arith.cmpi eq, %arg1, %c0_i32 : i32
    %1 = arith.extui %0 : i1 to i32
    %c0_i32_0 = arith.constant 0 : i32
    %2 = arith.cmpi ne, %1, %c0_i32_0 : i32
    scf.if %2 {
      %c0_62 = arith.constant 0 : index
      %c0_63 = arith.constant 0 : index
      %c0_64 = arith.constant 0 : index
      %107 = vector.load %arg5[%c0_62, %c0_63, %c0_64] : memref<1x8x128xf32, #tpu.memory_space<vmem>>, vector<1x8x128xf32>
      %108 = vector.shape_cast %107 : vector<1x8x128xf32> to vector<8x128xf32>
      %c0_65 = arith.constant 0 : index
      %c0_66 = arith.constant 0 : index
      %109 = vector.load %arg7[%c0_65, %c0_66] : memref<8x128xf32, #tpu.memory_space<vmem>>, vector<8x128xf32>
      tpu.vector_store %arg7[%c0_65, %c0_66], %108 {strides = array<i32>} : memref<8x128xf32, #tpu.memory_space<vmem>>, vector<8x128xf32>,
    } else {
    }
    %c0 = arith.constant 0 : index
    %c0_1 = arith.constant 0 : index
    %c0_2 = arith.constant 0 : index
    %3 = vector.load %arg2[%c0, %c0_1, %c0_2] : memref<8x8x32xf32, #tpu.memory_space<vmem>>, vector<8x8x32xf32>
    %4 = vector.shape_cast %3 : vector<8x8x32xf32> to vector<64x32xf32>
    %c0_3 = arith.constant 0 : index
    %c0_4 = arith.constant 0 : index
    %5 = vector.load %arg3[%c0_3, %c0_4] : memref<32x128xf32, #tpu.memory_space<vmem>>, vector<32x128xf32>
    %cst = arith.constant dense<0.000000e+00> : vector<64x128xf32>
    %6 = tpu.matmul %4, %5, %cst {dimension_numbers = #tpu.dot_dimension_numbers<[1], [0], [0], [1], [0, 0, 1, 1], [], []>} : vector<64x32xf32>, vector<32x128xf32>, vector<64x128xf32> -> vector<64x128xf32>
    %c0_5 = arith.constant 0 : index
    %c0_6 = arith.constant 0 : index
    %7 = vector.load %arg8[%c0_5, %c0_6] : memref<64x128xf32, #tpu.memory_space<vmem>>, vector<64x128xf32>
    tpu.vector_store %arg8[%c0_5, %c0_6], %6 {strides = array<i32>} : memref<64x128xf32, #tpu.memory_space<vmem>>, vector<64x128xf32>,
    %c0_7 = arith.constant 0 : index
    %c0_8 = arith.constant 0 : index
    %8 = vector.load %arg4[%c0_7, %c0_8] : memref<128x128xf32, #tpu.memory_space<vmem>>, vector<128x128xf32>
    %c0_9 = arith.constant 0 : index
    %c0_10 = arith.constant 0 : index
    %9 = vector.load %arg7[%c0_9, %c0_10] : memref<8x128xf32, #tpu.memory_space<vmem>>, vector<8x128xf32>
    %c0_i32_11 = arith.constant 0 : i32
    %c8_i32 = arith.constant 8 : i32
    %10 = arith.muli %c0_i32_11, %c8_i32 : i32
    %11 = tpu.assume_multiple %10, 8 : i32
    %12 = arith.index_cast %11 : i32 to index
    %c0_12 = arith.constant 0 : index
    %13 = vector.load %arg8[%12, %c0_12] : memref<64x128xf32, #tpu.memory_space<vmem>>, vector<8x128xf32>
    %cst_13 = arith.constant dense<0.000000e+00> : vector<8x128xf32>
    %14 = tpu.matmul %9, %8, %cst_13 {dimension_numbers = #tpu.dot_dimension_numbers<[1], [0], [0], [1], [0, 0, 1, 1], [], []>} : vector<8x128xf32>, vector<128x128xf32>, vector<8x128xf32> -> vector<8x128xf32>
    %15 = arith.addf %13, %14 : vector<8x128xf32>
    %cst_14 = arith.constant 0.000000e+00 : f32
    %16 = vector.broadcast %cst_14 : f32 to vector<8x128xf32>
    %17 = arith.maximumf %15, %16 : vector<8x128xf32>
    %18 = arith.index_cast %c0_i32_11 : i32 to index
    %c0_15 = arith.constant 0 : index
    %c0_16 = arith.constant 0 : index
    %19 = vector.load %arg6[%18, %c0_15, %c0_16] : memref<8x8x128xf32, #tpu.memory_space<vmem>>, vector<1x8x128xf32>
    %20 = vector.shape_cast %19 : vector<1x8x128xf32> to vector<8x128xf32>
    %21 = vector.shape_cast %17 : vector<8x128xf32> to vector<1x8x128xf32>
    tpu.vector_store %arg6[%18, %c0_15, %c0_16], %21 {strides = array<i32>} : memref<8x8x128xf32, #tpu.memory_space<vmem>>, vector<1x8x128xf32>,
    %c1_i32 = arith.constant 1 : i32
    %c8_i32_17 = arith.constant 8 : i32
    %22 = arith.muli %c1_i32, %c8_i32_17 : i32
    %23 = tpu.assume_multiple %22, 8 : i32
    %24 = arith.index_cast %23 : i32 to index
    %c0_18 = arith.constant 0 : index
    %25 = vector.load %arg8[%24, %c0_18] : memref<64x128xf32, #tpu.memory_space<vmem>>, vector<8x128xf32>
    %cst_19 = arith.constant dense<0.000000e+00> : vector<8x128xf32>
    %26 = tpu.matmul %17, %8, %cst_19 {dimension_numbers = #tpu.dot_dimension_numbers<[1], [0], [0], [1], [0, 0, 1, 1], [], []>} : vector<8x128xf32>, vector<128x128xf32>, vector<8x128xf32> -> vector<8x128xf32>
    %27 = arith.addf %25, %26 : vector<8x128xf32>
    %cst_20 = arith.constant 0.000000e+00 : f32
    %28 = vector.broadcast %cst_20 : f32 to vector<8x128xf32>
    %29 = arith.maximumf %27, %28 : vector<8x128xf32>
    %30 = arith.index_cast %c1_i32 : i32 to index
    %c0_21 = arith.constant 0 : index
    %c0_22 = arith.constant 0 : index
    %31 = vector.load %arg6[%30, %c0_21, %c0_22] : memref<8x8x128xf32, #tpu.memory_space<vmem>>, vector<1x8x128xf32>
    %32 = vector.shape_cast %31 : vector<1x8x128xf32> to vector<8x128xf32>
    %33 = vector.shape_cast %29 : vector<8x128xf32> to vector<1x8x128xf32>
    tpu.vector_store %arg6[%30, %c0_21, %c0_22], %33 {strides = array<i32>} : memref<8x8x128xf32, #tpu.memory_space<vmem>>, vector<1x8x128xf32>,
    %c2_i32 = arith.constant 2 : i32
    %c8_i32_23 = arith.constant 8 : i32
    %34 = arith.muli %c2_i32, %c8_i32_23 : i32
    %35 = tpu.assume_multiple %34, 8 : i32
    %36 = arith.index_cast %35 : i32 to index
    %c0_24 = arith.constant 0 : index
    %37 = vector.load %arg8[%36, %c0_24] : memref<64x128xf32, #tpu.memory_space<vmem>>, vector<8x128xf32>
    %cst_25 = arith.constant dense<0.000000e+00> : vector<8x128xf32>
    %38 = tpu.matmul %29, %8, %cst_25 {dimension_numbers = #tpu.dot_dimension_numbers<[1], [0], [0], [1], [0, 0, 1, 1], [], []>} : vector<8x128xf32>, vector<128x128xf32>, vector<8x128xf32> -> vector<8x128xf32>
    %39 = arith.addf %37, %38 : vector<8x128xf32>
    %cst_26 = arith.constant 0.000000e+00 : f32
    %40 = vector.broadcast %cst_26 : f32 to vector<8x128xf32>
    %41 = arith.maximumf %39, %40 : vector<8x128xf32>
    %42 = arith.index_cast %c2_i32 : i32 to index
    %c0_27 = arith.constant 0 : index
    %c0_28 = arith.constant 0 : index
    %43 = vector.load %arg6[%42, %c0_27, %c0_28] : memref<8x8x128xf32, #tpu.memory_space<vmem>>, vector<1x8x128xf32>
    %44 = vector.shape_cast %43 : vector<1x8x128xf32> to vector<8x128xf32>
    %45 = vector.shape_cast %41 : vector<8x128xf32> to vector<1x8x128xf32>
    tpu.vector_store %arg6[%42, %c0_27, %c0_28], %45 {strides = array<i32>} : memref<8x8x128xf32, #tpu.memory_space<vmem>>, vector<1x8x128xf32>,
    %c3_i32 = arith.constant 3 : i32
    %c8_i32_29 = arith.constant 8 : i32
    %46 = arith.muli %c3_i32, %c8_i32_29 : i32
    %47 = tpu.assume_multiple %46, 8 : i32
    %48 = arith.index_cast %47 : i32 to index
    %c0_30 = arith.constant 0 : index
    %49 = vector.load %arg8[%48, %c0_30] : memref<64x128xf32, #tpu.memory_space<vmem>>, vector<8x128xf32>
    %cst_31 = arith.constant dense<0.000000e+00> : vector<8x128xf32>
    %50 = tpu.matmul %41, %8, %cst_31 {dimension_numbers = #tpu.dot_dimension_numbers<[1], [0], [0], [1], [0, 0, 1, 1], [], []>} : vector<8x128xf32>, vector<128x128xf32>, vector<8x128xf32> -> vector<8x128xf32>
    %51 = arith.addf %49, %50 : vector<8x128xf32>
    %cst_32 = arith.constant 0.000000e+00 : f32
    %52 = vector.broadcast %cst_32 : f32 to vector<8x128xf32>
    %53 = arith.maximumf %51, %52 : vector<8x128xf32>
    %54 = arith.index_cast %c3_i32 : i32 to index
    %c0_33 = arith.constant 0 : index
    %c0_34 = arith.constant 0 : index
    %55 = vector.load %arg6[%54, %c0_33, %c0_34] : memref<8x8x128xf32, #tpu.memory_space<vmem>>, vector<1x8x128xf32>
    %56 = vector.shape_cast %55 : vector<1x8x128xf32> to vector<8x128xf32>
    %57 = vector.shape_cast %53 : vector<8x128xf32> to vector<1x8x128xf32>
    tpu.vector_store %arg6[%54, %c0_33, %c0_34], %57 {strides = array<i32>} : memref<8x8x128xf32, #tpu.memory_space<vmem>>, vector<1x8x128xf32>,
    %c4_i32 = arith.constant 4 : i32
    %c8_i32_35 = arith.constant 8 : i32
    %58 = arith.muli %c4_i32, %c8_i32_35 : i32
    %59 = tpu.assume_multiple %58, 8 : i32
    %60 = arith.index_cast %59 : i32 to index
    %c0_36 = arith.constant 0 : index
    %61 = vector.load %arg8[%60, %c0_36] : memref<64x128xf32, #tpu.memory_space<vmem>>, vector<8x128xf32>
    %cst_37 = arith.constant dense<0.000000e+00> : vector<8x128xf32>
    %62 = tpu.matmul %53, %8, %cst_37 {dimension_numbers = #tpu.dot_dimension_numbers<[1], [0], [0], [1], [0, 0, 1, 1], [], []>} : vector<8x128xf32>, vector<128x128xf32>, vector<8x128xf32> -> vector<8x128xf32>
    %63 = arith.addf %61, %62 : vector<8x128xf32>
    %cst_38 = arith.constant 0.000000e+00 : f32
    %64 = vector.broadcast %cst_38 : f32 to vector<8x128xf32>
    %65 = arith.maximumf %63, %64 : vector<8x128xf32>
    %66 = arith.index_cast %c4_i32 : i32 to index
    %c0_39 = arith.constant 0 : index
    %c0_40 = arith.constant 0 : index
    %67 = vector.load %arg6[%66, %c0_39, %c0_40] : memref<8x8x128xf32, #tpu.memory_space<vmem>>, vector<1x8x128xf32>
    %68 = vector.shape_cast %67 : vector<1x8x128xf32> to vector<8x128xf32>
    %69 = vector.shape_cast %65 : vector<8x128xf32> to vector<1x8x128xf32>
    tpu.vector_store %arg6[%66, %c0_39, %c0_40], %69 {strides = array<i32>} : memref<8x8x128xf32, #tpu.memory_space<vmem>>, vector<1x8x128xf32>,
    %c5_i32 = arith.constant 5 : i32
    %c8_i32_41 = arith.constant 8 : i32
    %70 = arith.muli %c5_i32, %c8_i32_41 : i32
    %71 = tpu.assume_multiple %70, 8 : i32
    %72 = arith.index_cast %71 : i32 to index
    %c0_42 = arith.constant 0 : index
    %73 = vector.load %arg8[%72, %c0_42] : memref<64x128xf32, #tpu.memory_space<vmem>>, vector<8x128xf32>
    %cst_43 = arith.constant dense<0.000000e+00> : vector<8x128xf32>
    %74 = tpu.matmul %65, %8, %cst_43 {dimension_numbers = #tpu.dot_dimension_numbers<[1], [0], [0], [1], [0, 0, 1, 1], [], []>} : vector<8x128xf32>, vector<128x128xf32>, vector<8x128xf32> -> vector<8x128xf32>
    %75 = arith.addf %73, %74 : vector<8x128xf32>
    %cst_44 = arith.constant 0.000000e+00 : f32
    %76 = vector.broadcast %cst_44 : f32 to vector<8x128xf32>
    %77 = arith.maximumf %75, %76 : vector<8x128xf32>
    %78 = arith.index_cast %c5_i32 : i32 to index
    %c0_45 = arith.constant 0 : index
    %c0_46 = arith.constant 0 : index
    %79 = vector.load %arg6[%78, %c0_45, %c0_46] : memref<8x8x128xf32, #tpu.memory_space<vmem>>, vector<1x8x128xf32>
    %80 = vector.shape_cast %79 : vector<1x8x128xf32> to vector<8x128xf32>
    %81 = vector.shape_cast %77 : vector<8x128xf32> to vector<1x8x128xf32>
    tpu.vector_store %arg6[%78, %c0_45, %c0_46], %81 {strides = array<i32>} : memref<8x8x128xf32, #tpu.memory_space<vmem>>, vector<1x8x128xf32>,
    %c6_i32 = arith.constant 6 : i32
    %c8_i32_47 = arith.constant 8 : i32
    %82 = arith.muli %c6_i32, %c8_i32_47 : i32
    %83 = tpu.assume_multiple %82, 8 : i32
    %84 = arith.index_cast %83 : i32 to index
    %c0_48 = arith.constant 0 : index
    %85 = vector.load %arg8[%84, %c0_48] : memref<64x128xf32, #tpu.memory_space<vmem>>, vector<8x128xf32>
    %cst_49 = arith.constant dense<0.000000e+00> : vector<8x128xf32>
    %86 = tpu.matmul %77, %8, %cst_49 {dimension_numbers = #tpu.dot_dimension_numbers<[1], [0], [0], [1], [0, 0, 1, 1], [], []>} : vector<8x128xf32>, vector<128x128xf32>, vector<8x128xf32> -> vector<8x128xf32>
    %87 = arith.addf %85, %86 : vector<8x128xf32>
    %cst_50 = arith.constant 0.000000e+00 : f32
    %88 = vector.broadcast %cst_50 : f32 to vector<8x128xf32>
    %89 = arith.maximumf %87, %88 : vector<8x128xf32>
    %90 = arith.index_cast %c6_i32 : i32 to index
    %c0_51 = arith.constant 0 : index
    %c0_52 = arith.constant 0 : index
    %91 = vector.load %arg6[%90, %c0_51, %c0_52] : memref<8x8x128xf32, #tpu.memory_space<vmem>>, vector<1x8x128xf32>
    %92 = vector.shape_cast %91 : vector<1x8x128xf32> to vector<8x128xf32>
    %93 = vector.shape_cast %89 : vector<8x128xf32> to vector<1x8x128xf32>
    tpu.vector_store %arg6[%90, %c0_51, %c0_52], %93 {strides = array<i32>} : memref<8x8x128xf32, #tpu.memory_space<vmem>>, vector<1x8x128xf32>,
    %c7_i32 = arith.constant 7 : i32
    %c8_i32_53 = arith.constant 8 : i32
    %94 = arith.muli %c7_i32, %c8_i32_53 : i32
    %95 = tpu.assume_multiple %94, 8 : i32
    %96 = arith.index_cast %95 : i32 to index
    %c0_54 = arith.constant 0 : index
    %97 = vector.load %arg8[%96, %c0_54] : memref<64x128xf32, #tpu.memory_space<vmem>>, vector<8x128xf32>
    %cst_55 = arith.constant dense<0.000000e+00> : vector<8x128xf32>
    %98 = tpu.matmul %89, %8, %cst_55 {dimension_numbers = #tpu.dot_dimension_numbers<[1], [0], [0], [1], [0, 0, 1, 1], [], []>} : vector<8x128xf32>, vector<128x128xf32>, vector<8x128xf32> -> vector<8x128xf32>
    %99 = arith.addf %97, %98 : vector<8x128xf32>
    %cst_56 = arith.constant 0.000000e+00 : f32
    %100 = vector.broadcast %cst_56 : f32 to vector<8x128xf32>
    %101 = arith.maximumf %99, %100 : vector<8x128xf32>
    %102 = arith.index_cast %c7_i32 : i32 to index
    %c0_57 = arith.constant 0 : index
    %c0_58 = arith.constant 0 : index
    %103 = vector.load %arg6[%102, %c0_57, %c0_58] : memref<8x8x128xf32, #tpu.memory_space<vmem>>, vector<1x8x128xf32>
    %104 = vector.shape_cast %103 : vector<1x8x128xf32> to vector<8x128xf32>
    %105 = vector.shape_cast %101 : vector<8x128xf32> to vector<1x8x128xf32>
    tpu.vector_store %arg6[%102, %c0_57, %c0_58], %105 {strides = array<i32>} : memref<8x8x128xf32, #tpu.memory_space<vmem>>, vector<1x8x128xf32>,
    %c8_i32_59 = arith.constant 8 : i32
    %c0_60 = arith.constant 0 : index
    %c0_61 = arith.constant 0 : index
    %106 = vector.load %arg7[%c0_60, %c0_61] : memref<8x128xf32, #tpu.memory_space<vmem>>, vector<8x128xf32>
    tpu.vector_store %arg7[%c0_60, %c0_61], %101 {strides = array<i32>} : memref<8x128xf32, #tpu.memory_space<vmem>>, vector<8x128xf32>,
    return
  }
  func.func @transform_0(%arg0: i32, %arg1: i32) -> (i32, i32, i32) {
    %c0_i32 = arith.constant 0 : i32
    %c0_i32_0 = arith.constant 0 : i32
    return %arg1, %arg0, %c0_i32 : i32, i32, i32
  }
  func.func @transform_1(%arg0: i32, %arg1: i32) -> (i32, i32) {
    %c0_i32 = arith.constant 0 : i32
    %c0_i32_0 = arith.constant 0 : i32
    %c0_i32_1 = arith.constant 0 : i32
    return %c0_i32, %c0_i32_0 : i32, i32
  }
  func.func @transform_2(%arg0: i32, %arg1: i32) -> (i32, i32) {
    %c0_i32 = arith.constant 0 : i32
    %c0_i32_0 = arith.constant 0 : i32
    %c0_i32_1 = arith.constant 0 : i32
    return %c0_i32, %c0_i32_0 : i32, i32
  }
  func.func @transform_3(%arg0: i32, %arg1: i32) -> (i32, i32, i32) {
    %c0_i32 = arith.constant 0 : i32
    %c0_i32_0 = arith.constant 0 : i32
    %c0_i32_1 = arith.constant 0 : i32
    return %c0_i32, %arg0, %c0_i32_0 : i32, i32, i32
  }
  func.func @transform_4(%arg0: i32, %arg1: i32) -> (i32, i32, i32) {
    %c0_i32 = arith.constant 0 : i32
    %c0_i32_0 = arith.constant 0 : i32
    return %arg1, %arg0, %c0_i32 : i32, i32, i32
  }
}

</mosaic_0001>

<bundles_post_ra>
// kernel: tpu_custom_call.1
= control target key start
LH: loop header
LB: loop body
LE: loop exit
PB: predicated region body
PF: predicated region fallthrough
CT: control target
= control target key end

     0   :  { %9 = vsyncpa [#allocation5], 0  ;;  %s786_s0 = inlined_call_operand.hbm [shape: f32[8,8,32], index: 0, kind: input, shape index: {}]   ;;  %s787_s1 = inlined_call_operand.hbm [shape: f32[32,128], index: 1, kind: input, shape index: {}]   ;;  %s788_s2 = inlined_call_operand.hbm [shape: f32[128,128], index: 2, kind: input, shape index: {}]   ;;  %s789_s3 = inlined_call_operand.hbm [shape: f32[1,8,128], index: 3, kind: input, shape index: {}]   ;;  %s790_s4 = inlined_call_operand.hbm [shape: f32[8,8,128], index: 4, kind: output, shape index: {}]  }
   0x1   :  { %10 = vsyncpa [#allocation8], 0 }
   0x2   :  { %11 = vsyncpa [#allocation11], 0 }
   0x3   :  { %12 = vsyncpa [#allocation6], 0  ;;  %s30_s17 = sshll.u32 %s787_s1, 4  ;;  %s559_s18 = smov [#allocation7]   ;;  %s31_s17 = int_to_ptr.hbm [resolvable:$true] %s30_s17 }
   0x4   :  { %s32_s19 = sshll.u32 %s559_s18, 4  ;;  %s17_s22 = sshll.u32 %s786_s0, 4  ;;  %s33_s19 = int_to_ptr.vmem [resolvable:$true] %s32_s19  ;;  %s18_s22 = int_to_ptr.hbm [resolvable:$true] %s17_s22 }
   0x5   :  { %s560_s23 = smov 128   ;;  %s561_s24 = smov 8  }
   0x6   :  { %38 = dma.hbm_to_vmem [thread:$0]  %s31_s17, 512, %s33_s19, [#allocation8], %s560_s23, %s560_s23, %s561_s24  }
   0x7   :  { %s562_s25 = smov [#allocation4]   ;;  %s43_s1 = sshll.u32 %s788_s2, 4  ;;  %s44_s1 = int_to_ptr.hbm [resolvable:$true] %s43_s1 }
   0x8   :  { %s19_s26 = sshll.u32 %s562_s25, 4  ;;  %s57_s30 = sshll.u32 %s789_s3, 4  ;;  %s20_s26 = int_to_ptr.vmem [resolvable:$true] %s19_s26  ;;  %s58_s30 = int_to_ptr.hbm [resolvable:$true] %s57_s30 }
   0x9   :  { %25 = dma.hbm_to_vmem [thread:$0]  %s18_s22, 1024, %s20_s26, [#allocation5], %s560_s23, %s560_s23, %s561_s24  }
   0xa   :  { %s563_s5 = smov [#allocation9]   ;;  %s564_s7 = smov [#allocation10]  }
   0xb   :  { %s45_s6 = sshll.u32 %s563_s5, 4  ;;  %s59_s2 = sshll.u32 %s564_s7, 4  ;;  %s46_s6 = int_to_ptr.vmem [resolvable:$true] %s45_s6  ;;  %s60_s2 = int_to_ptr.vmem [resolvable:$true] %s59_s2 }
   0xc   :  { %51 = dma.hbm_to_vmem [thread:$0]  %s44_s1, 2048, %s46_s6, [#allocation8], %s560_s23, %s560_s23, %s561_s24  }
   0xd   :  { %62 = dma.hbm_to_vmem [thread:$0]  %s58_s30, 128, %s60_s2, [#allocation11]  }
   0xe   :  { %551 = dma.done.wait [#allocation5], 1024  }
   0xf   :  { %552 = vsyncadd [#allocation5], 4294966272 }
  0x10   :  { %553 = dma.done.wait [#allocation8], 2560  }
  0x11   :  { %554 = vsyncadd [#allocation8], 4294964736 }
  0x12   :  { %555 = dma.done.wait [#allocation11], 128  }
  0x13   :  { %556 = vsyncadd [#allocation11], 4294967168  ;;  %v612_v0 = vld [vmem:[#allocation9 + $0x78] sm:$0xff]  ;;  %v614_v1 = vld [vmem:[#allocation9 + $0x70] sm:$0xff]  ;;  %vm97_vm0 = vcmask 261120   ;;  %s565_s3 = smov [#allocation12]  }
  0x14   :  { %189 = vmatpush.msra.mxu1 %v612_v0  ;;  %214 = vmatpush.msra.mxu2 %v612_v0  ;;  %v618_v2 = vld [vmem:[#allocation9 + $0x68] sm:$0xff]  ;;  %v623_v3 = vld [vmem:[#allocation9 + $0x60] sm:$0xff]  ;;  %v96_v4 = vld [vmem:[#allocation7 + $0x18] sm:$0xff]  ;;  %s399_s8 = sshll.u32 %s565_s3, 4  ;;  %s401_s11 = sshll.u32 %s790_s4, 4  ;;  %s400_s8 = int_to_ptr.vmem [resolvable:$true] %s399_s8  ;;  %s402_s11 = int_to_ptr.hbm [resolvable:$true] %s401_s11 }
  0x15   :  { %240 = vmatpush.msra.mxu3 %v612_v0  ;;  %v95_v5 = vld [vmem:[#allocation7 + $0x10] sm:$0xff]  ;;  %134 = vmatpush.msra.mxu0 %v96_v4  ;;  %v627_v6 = vld [vmem:[#allocation9 + $0x58] sm:$0xff]  ;;  %v94_v7 = vld [vmem:[#allocation7 + $0x8] sm:$0xff] }
  0x16   :  { %190 = vmatpush.msra.mxu1 %v614_v1  ;;  %215 = vmatpush.msra.mxu2 %v614_v1  ;;  %v632_v8 = vld [vmem:[#allocation9 + $0x50] sm:$0xff]  ;;  %v93_v9 = vld [vmem:[#allocation7] sm:$0xff]  ;;  %v637_v11 = vld [vmem:[#allocation9 + $0x48] sm:$0xff] }
  0x17   :  { %241 = vmatpush.msra.mxu3 %v614_v1  ;;  %135 = vmatpush.msra.mxu0 %v95_v5  ;;  %v85_v10 = vld [vmem:[#allocation4] sm:$0xff]  ;;  %v648_v13 = vld [vmem:[#allocation9 + $0x38] sm:$0xff]  ;;  %v654_v14 = vld [vmem:[#allocation9 + $0x30] sm:$0xff] }
  0x18   :  { %191 = vmatpush.msra.mxu1 %v618_v2  ;;  %216 = vmatpush.msra.mxu2 %v618_v2  ;;  %v642_v12 = vld [vmem:[#allocation9 + $0x40] sm:$0xff]  ;;  %v660_v15 = vld [vmem:[#allocation9 + $0x28] sm:$0xff]  ;;  %v672_v17 = vld [vmem:[#allocation9 + $0x18] sm:$0xff] }
  0x19   :  { %242 = vmatpush.msra.mxu3 %v618_v2  ;;  %136 = vmatpush.msra.mxu0 %v94_v7  ;;  %v666_v16 = vld [vmem:[#allocation9 + $0x20] sm:$0xff]  ;;  %v678_v18 = vld [vmem:[#allocation9 + $0x10] sm:$0xff]  ;;  %v684_v19 = vld [vmem:[#allocation9 + $0x8] sm:$0xff] }
  0x1a   :  { %192 = vmatpush.msra.mxu1 %v623_v3  ;;  %217 = vmatpush.msra.mxu2 %v623_v3  ;;  %v690_v20 = vld [vmem:[#allocation9] sm:$0xff]  ;;  %v86_v22 = vld [vmem:[#allocation4 + $0x8] sm:$0xff]  ;;  %v87_v27 = vld [vmem:[#allocation4 + $0x10] sm:$0xff] }
  0x1b   :  { %243 = vmatpush.msra.mxu3 %v623_v3  ;;  %137 = vmatpush.msra.mxu0 %v93_v9  ;;  %v83_v21 = vld [vmem:[#allocation10] sm:$0xff]  ;;  %v88_v32 = vld [vmem:[#allocation4 + $0x18] sm:$0xff]  ;;  %v90_v42 = vld [vmem:[#allocation4 + $0x28] sm:$0xff] }
  0x1c   :  { %193 = vmatpush.msra.mxu1 %v627_v6  ;;  %218 = vmatpush.msra.mxu2 %v627_v6  ;;  %v89_v37 = vld [vmem:[#allocation4 + $0x20] sm:$0xff]  ;;  %v91_v43 = vld [vmem:[#allocation4 + $0x30] sm:$0xff]  ;;  %v92_v44 = vld [vmem:[#allocation4 + $0x38] sm:$0xff] }
  0x1d   :  { %244 = vmatpush.msra.mxu3 %v627_v6  ;;  %416 = vmatmul.msk.f32.vlgmr.msra.gmra.mxu0 %vm97_vm0, %v85_v10 }
  0x1e   :  { %194 = vmatpush.msra.mxu1 %v632_v8  ;;  %219 = vmatpush.msra.mxu2 %v632_v8 }
  0x1f   :  { %245 = vmatpush.msra.mxu3 %v632_v8  ;;  %344 = vmatpush.msrb.mxu0 %v612_v0 }
  0x20   :  { %195 = vmatpush.msra.mxu1 %v637_v11  ;;  %220 = vmatpush.msra.mxu2 %v637_v11 }
  0x21   :  { %246 = vmatpush.msra.mxu3 %v637_v11  ;;  %345 = vmatpush.msrb.mxu0 %v614_v1 }
  0x22   :  { %196 = vmatpush.msra.mxu1 %v642_v12  ;;  %221 = vmatpush.msra.mxu2 %v642_v12 }
  0x23   :  { %247 = vmatpush.msra.mxu3 %v642_v12  ;;  %346 = vmatpush.msrb.mxu0 %v618_v2 }
  0x24   :  { %197 = vmatpush.msra.mxu1 %v648_v13  ;;  %222 = vmatpush.msra.mxu2 %v648_v13 }
  0x25   :  { %248 = vmatpush.msra.mxu3 %v648_v13  ;;  %347 = vmatpush.msrb.mxu0 %v623_v3 }
  0x26   :  { %198 = vmatpush.msra.mxu1 %v654_v14  ;;  %223 = vmatpush.msra.mxu2 %v654_v14 }
  0x27   :  { %249 = vmatpush.msra.mxu3 %v654_v14  ;;  %348 = vmatpush.msrb.mxu0 %v627_v6 }
  0x28   :  { %199 = vmatpush.msra.mxu1 %v660_v15  ;;  %224 = vmatpush.msra.mxu2 %v660_v15 }
  0x29   :  { %250 = vmatpush.msra.mxu3 %v660_v15  ;;  %349 = vmatpush.msrb.mxu0 %v632_v8 }
  0x2a   :  { %200 = vmatpush.msra.mxu1 %v666_v16  ;;  %225 = vmatpush.msra.mxu2 %v666_v16 }
  0x2b   :  { %251 = vmatpush.msra.mxu3 %v666_v16  ;;  %350 = vmatpush.msrb.mxu0 %v637_v11 }
  0x2c   :  { %201 = vmatpush.msra.mxu1 %v672_v17  ;;  %226 = vmatpush.msra.mxu2 %v672_v17 }
  0x2d   :  { %252 = vmatpush.msra.mxu3 %v672_v17  ;;  %351 = vmatpush.msrb.mxu0 %v642_v12 }
  0x2e   :  { %202 = vmatpush.msra.mxu1 %v678_v18  ;;  %227 = vmatpush.msra.mxu2 %v678_v18 }
  0x2f   :  { %253 = vmatpush.msra.mxu3 %v678_v18  ;;  %352 = vmatpush.msrb.mxu0 %v648_v13 }
  0x30   :  { %203 = vmatpush.msra.mxu1 %v684_v19  ;;  %228 = vmatpush.msra.mxu2 %v684_v19 }
  0x31   :  { %254 = vmatpush.msra.mxu3 %v684_v19  ;;  %353 = vmatpush.msrb.mxu0 %v654_v14 }
  0x32   :  { %204 = vmatpush.msra.mxu1 %v690_v20  ;;  %229 = vmatpush.msra.mxu2 %v690_v20 }
  0x33   :  { %205 = vmatmul.f32.vlgmr.msra.gmra.mxu1 %v83_v21  ;;  %255 = vmatpush.msra.mxu3 %v690_v20 }
  0x34   :  { %266 = vmatpush.msrb.mxu1 %v612_v0  ;;  %292 = vmatpush.msrb.mxu2 %v612_v0 }
  0x35   :  { %318 = vmatpush.msrb.mxu3 %v612_v0  ;;  %354 = vmatpush.msrb.mxu0 %v660_v15 }
  0x36   :  { %267 = vmatpush.msrb.mxu1 %v614_v1  ;;  %293 = vmatpush.msrb.mxu2 %v614_v1 }
  0x37   :  { %319 = vmatpush.msrb.mxu3 %v614_v1  ;;  %355 = vmatpush.msrb.mxu0 %v666_v16 }
  0x38   :  { %268 = vmatpush.msrb.mxu1 %v618_v2  ;;  %294 = vmatpush.msrb.mxu2 %v618_v2 }
  0x39   :  { %320 = vmatpush.msrb.mxu3 %v618_v2  ;;  %356 = vmatpush.msrb.mxu0 %v672_v17 }
  0x3a   :  { %269 = vmatpush.msrb.mxu1 %v623_v3  ;;  %295 = vmatpush.msrb.mxu2 %v623_v3 }
  0x3b   :  { %321 = vmatpush.msrb.mxu3 %v623_v3  ;;  %357 = vmatpush.msrb.mxu0 %v678_v18 }
  0x3c   :  { %270 = vmatpush.msrb.mxu1 %v627_v6  ;;  %296 = vmatpush.msrb.mxu2 %v627_v6 }
  0x3d   :  { %322 = vmatpush.msrb.mxu3 %v627_v6  ;;  %358 = vmatpush.msrb.mxu0 %v684_v19 }
  0x3e   :  { %271 = vmatpush.msrb.mxu1 %v632_v8  ;;  %297 = vmatpush.msrb.mxu2 %v632_v8 }
  0x3f   :  { %323 = vmatpush.msrb.mxu3 %v632_v8  ;;  %359 = vmatpush.msrb.mxu0 %v690_v20 }
  0x40   :  { %272 = vmatpush.msrb.mxu1 %v637_v11  ;;  %298 = vmatpush.msrb.mxu2 %v637_v11 }
  0x41   :  { %324 = vmatpush.msrb.mxu3 %v637_v11  ;;  %417 = vmatmul.msk.f32.gmra.mxu0 %vm97_vm0, %v86_v22 }
  0x42   :  { %273 = vmatpush.msrb.mxu1 %v642_v12  ;;  %299 = vmatpush.msrb.mxu2 %v642_v12 }
  0x43   :  { %325 = vmatpush.msrb.mxu3 %v642_v12 }
  0x44   :  { %274 = vmatpush.msrb.mxu1 %v648_v13  ;;  %300 = vmatpush.msrb.mxu2 %v648_v13 }
  0x45   :  { %326 = vmatpush.msrb.mxu3 %v648_v13 }
  0x46   :  { %275 = vmatpush.msrb.mxu1 %v654_v14  ;;  %301 = vmatpush.msrb.mxu2 %v654_v14 }
  0x47   :  { %327 = vmatpush.msrb.mxu3 %v654_v14 }
  0x48   :  { %276 = vmatpush.msrb.mxu1 %v660_v15  ;;  %302 = vmatpush.msrb.mxu2 %v660_v15 }
  0x49   :  { %328 = vmatpush.msrb.mxu3 %v660_v15  ;;  %418 = vmatmul.msk.f32.gmra.mxu0 %vm97_vm0, %v87_v27 }
  0x4a   :  { %277 = vmatpush.msrb.mxu1 %v666_v16  ;;  %303 = vmatpush.msrb.mxu2 %v666_v16 }
  0x4b   :  { %329 = vmatpush.msrb.mxu3 %v666_v16 }
  0x4c   :  { %278 = vmatpush.msrb.mxu1 %v672_v17  ;;  %304 = vmatpush.msrb.mxu2 %v672_v17 }
  0x4d   :  { %330 = vmatpush.msrb.mxu3 %v672_v17 }
  0x4e   :  { %279 = vmatpush.msrb.mxu1 %v678_v18  ;;  %305 = vmatpush.msrb.mxu2 %v678_v18 }
  0x4f   :  { %331 = vmatpush.msrb.mxu3 %v678_v18 }
  0x50   :  { %280 = vmatpush.msrb.mxu1 %v684_v19  ;;  %306 = vmatpush.msrb.mxu2 %v684_v19 }
  0x51   :  { %332 = vmatpush.msrb.mxu3 %v684_v19  ;;  %419 = vmatmul.msk.f32.gmra.mxu0 %vm97_vm0, %v88_v32 }
  0x52   :  { %281 = vmatpush.msrb.mxu1 %v690_v20  ;;  %307 = vmatpush.msrb.mxu2 %v690_v20 }
  0x53   :  { %333 = vmatpush.msrb.mxu3 %v690_v20 }
  0x54   :  { %370 = vmatpush.msra.mxu1 %v612_v0 }
  0x56   :  { %371 = vmatpush.msra.mxu1 %v614_v1 }
  0x58   :  { %372 = vmatpush.msra.mxu1 %v618_v2 }
  0x59   :  { %420 = vmatmul.msk.f32.gmra.mxu0 %vm97_vm0, %v89_v37 }
  0x5a   :  { %373 = vmatpush.msra.mxu1 %v623_v3 }
  0x5c   :  { %374 = vmatpush.msra.mxu1 %v627_v6 }
  0x5e   :  { %375 = vmatpush.msra.mxu1 %v632_v8 }
  0x60   :  { %376 = vmatpush.msra.mxu1 %v637_v11 }
  0x61   :  { %421 = vmatmul.msk.f32.gmra.mxu0 %vm97_vm0, %v90_v42 }
  0x62   :  { %377 = vmatpush.msra.mxu1 %v642_v12 }
  0x64   :  { %378 = vmatpush.msra.mxu1 %v648_v13 }
  0x66   :  { %379 = vmatpush.msra.mxu1 %v654_v14 }
  0x68   :  { %380 = vmatpush.msra.mxu1 %v660_v15 }
  0x69   :  { %422 = vmatmul.msk.f32.gmra.mxu0 %vm97_vm0, %v91_v43 }
  0x6a   :  { %381 = vmatpush.msra.mxu1 %v666_v16 }
  0x6c   :  { %382 = vmatpush.msra.mxu1 %v672_v17 }
  0x6e   :  { %383 = vmatpush.msra.mxu1 %v678_v18 }
  0x70   :  { %384 = vmatpush.msra.mxu1 %v684_v19 }
  0x71   :  { %423 = vmatmul.msk.f32.gmra.mxu0 %vm97_vm0, %v92_v44 }
  0x72   :  { %385 = vmatpush.msra.mxu1 %v690_v20 }
  0x9a   :  { %v139_v23 = vpop.f32.mrf.mxu0 }
  0xb0   :  { %v206_v24 = vpop.f32.mrf.mxu1 }
  0xb1   :  { %v209_v25 = vadd.f32 %v206_v24, %v139_v23 }
  0xb3   :  { %v210_v26 = vmax.f32 %v209_v25, 0.0 }
  0xb5   :  { %211 = vst [vmem:[#allocation12] sm:$0xff] %v210_v26  ;;  %230 = vmatmul.f32.vlgmr.msra.gmra.mxu2 %v210_v26 }
  0xbe   :  { %v142_v28 = vpop.f32.mrf.mxu0 }
  0xc6   :  { %v145_v33 = vpop.f32.mrf.mxu0 }
  0xce   :  { %v148_v38 = vpop.f32.mrf.mxu0 }
  0xd6   :  { %v151_v45 = vpop.f32.mrf.mxu0 }
  0xde   :  { %v154_v49 = vpop.f32.mrf.mxu0 }
  0xe6   :  { %v157_v53 = vpop.f32.mrf.mxu0 }
  0xee   :  { %v160_v54 = vpop.f32.mrf.mxu0 }
 0x138   :  { %v231_v29 = vpop.f32.mrf.mxu2 }
 0x139   :  { %v234_v30 = vadd.f32 %v231_v29, %v142_v28 }
 0x13b   :  { %v235_v31 = vmax.f32 %v234_v30, 0.0 }
 0x13d   :  { %237 = vst [vmem:[#allocation12 + $0x8] sm:$0xff] %v235_v31  ;;  %256 = vmatmul.f32.vlgmr.msra.gmra.mxu3 %v235_v31 }
 0x1c0   :  { %v257_v34 = vpop.f32.mrf.mxu3 }
 0x1c1   :  { %v260_v35 = vadd.f32 %v257_v34, %v145_v33 }
 0x1c3   :  { %v261_v36 = vmax.f32 %v260_v35, 0.0 }
 0x1c5   :  { %263 = vst [vmem:[#allocation12 + $0x10] sm:$0xff] %v261_v36  ;;  %282 = vmatmul.f32.vlgmr.msrb.gmra.mxu1 %v261_v36 }
 0x242   :  { %v283_v39 = vpop.f32.mrf.mxu1 }
 0x243   :  { %v286_v40 = vadd.f32 %v283_v39, %v148_v38 }
 0x245   :  { %v287_v41 = vmax.f32 %v286_v40, 0.0 }
 0x247   :  { %289 = vst [vmem:[#allocation12 + $0x18] sm:$0xff] %v287_v41  ;;  %308 = vmatmul.f32.vlgmr.msrb.gmra.mxu2 %v287_v41 }
 0x2ca   :  { %v309_v46 = vpop.f32.mrf.mxu2 }
 0x2cb   :  { %v312_v47 = vadd.f32 %v309_v46, %v151_v45 }
 0x2cd   :  { %v313_v48 = vmax.f32 %v312_v47, 0.0 }
 0x2cf   :  { %315 = vst [vmem:[#allocation12 + $0x20] sm:$0xff] %v313_v48  ;;  %334 = vmatmul.f32.vlgmr.msrb.gmra.mxu3 %v313_v48 }
 0x352   :  { %v335_v50 = vpop.f32.mrf.mxu3 }
 0x353   :  { %v338_v51 = vadd.f32 %v335_v50, %v154_v49 }
 0x355   :  { %v339_v52 = vmax.f32 %v338_v51, 0.0 }
 0x357   :  { %341 = vst [vmem:[#allocation12 + $0x28] sm:$0xff] %v339_v52  ;;  %360 = vmatmul.f32.vlgmr.msrb.gmra.mxu0 %v339_v52 }
 0x3d4   :  { %v361_v55 = vpop.f32.mrf.mxu0 }
 0x3d5   :  { %v364_v56 = vadd.f32 %v361_v55, %v157_v53 }
 0x3d7   :  { %v365_v57 = vmax.f32 %v364_v56, 0.0 }
 0x3d9   :  { %367 = vst [vmem:[#allocation12 + $0x30] sm:$0xff] %v365_v57  ;;  %386 = vmatmul.f32.vlgmr.msra.gmra.mxu1 %v365_v57 }
 0x456   :  { %v387_v58 = vpop.f32.mrf.mxu1 }
 0x457   :  { %v390_v59 = vadd.f32 %v387_v58, %v160_v54 }
 0x459   :  { %v391_v60 = vmax.f32 %v390_v59, 0.0 }
 0x45b   :  { %393 = vst [vmem:[#allocation12 + $0x38] sm:$0xff] %v391_v60 }
 0x45c   :  { %407 = dma.vmem_to_hbm [thread:$0]  %s400_s8, 1024, %s402_s11, [#allocation6], %s560_s23, %s560_s23, %s561_s24  }
 0x45d   :  { %557 = dma.done.wait [#allocation6], 1024  }
 0x45e   :  { %558 = vsyncadd [#allocation6], 4294966272 }
 0x45f   :  { %412 = vsyncpa [#allocation5], 1 }
 0x460   :  { %413 = vsyncpa [#allocation8], 1 }
 0x461   :  { %414 = vsyncpa [#allocation11], 1 }
 0x462   :  { %415 = vsyncpa [#allocation6], 1 }

</bundles_post_ra>
